<compile_context>
chip_gen: v6e
topology: v6e:2x2x1
jax: 0.10.0
libtpu: 0.0.40
codegen_flags: <defaults>
</compile_context>

<pallas_src>
import functools

import jax
import jax.numpy as jnp
from jax.experimental import pallas as pl
from jax.experimental.pallas import tpu as pltpu

NEG_INF = -1e9                 # safe only because logit/softmax math is f32
MXU_DTYPE = jnp.bfloat16       # MXU operand dtype; accumulation stays f32
MASK_DTYPE = jnp.bfloat16      # adjacency / one-hot masks (values are 0/1)


def _vmem_limit_bytes():
    """Chip-aware scoped-VMEM budget: ~3/4 of physical, capped at 96 MiB."""
    try:
        cap = int(pltpu.get_tpu_info().vmem_capacity_bytes)
        return int(min(cap * 3 // 4, 96 * 1024 * 1024))
    except Exception:
        return 48 * 1024 * 1024   # conservative fallback (fits every TPU gen)


VMEM_LIMIT = _vmem_limit_bytes()


def _dst_tile(n, n_branch, vmem_budget):
    """VMEM-aware dst-row tile that divides n (full block is the fallback)."""
    # per dst row per branch: ~4 live f32 [., N] temporaries + 2x-buffered
    # bf16 adjacency stream.
    per_row = max(1, n_branch) * n * (4 * 4 + 2 * 2)
    cap = max(16, (vmem_budget // 2) // per_row)   # half the budget for tiles
    best = n
    for cand in (512, 256, 128, 64, 32, 16):
        if cand <= cap and n % cand == 0:
            best = cand
            break
    # v7x megacore: prefer >=2 grid steps when a bf16-friendly split exists.
    if best == n:
        for cand in (n // 2, n // 4):
            if cand and cand % 16 == 0 and n % cand == 0 and cand <= cap:
                best = cand
                break
    return best


def _compiler_params(n_parallel_axes):
    return pltpu.CompilerParams(
        dimension_semantics=("parallel",) * n_parallel_axes,
        vmem_limit_bytes=VMEM_LIMIT)


# --------------------------------------------------------------------------
# Prologue projection kernel (runs once per pass, tiled over node rows):
#   x0 = lin0(x)                      (optional, fused)
#   haug = x0 @ [W_0 | .. | W_a_src cols | W_a_dst cols]
#   hs[br]  = x0 @ W_br   (bf16, MXU operand for the attention kernel)
#   e cols  = [e_src_0.. e_src_{nb-1}, e_dst_0.. e_dst_{nb-1}]  (f32)
# --------------------------------------------------------------------------
def _project_kernel(*refs, hidden, n_branch, fuse_lin0):
    if fuse_lin0:
        x_ref, w0_ref, b0_ref, waug_ref, hs_ref, e_ref = refs
        x = (jnp.dot(x_ref[...], w0_ref[...],
                     preferred_element_type=jnp.float32)
             + b0_ref[...]).astype(MXU_DTYPE)
    else:
        x_ref, waug_ref, hs_ref, e_ref = refs
        x = x_ref[...]
    haug = jnp.dot(x, waug_ref[...], preferred_element_type=jnp.float32)
    for br in range(n_branch):
        hs_ref[br] = haug[:, br * hidden:(br + 1) * hidden].astype(MXU_DTYPE)
    e_ref[...] = haug[:, n_branch * hidden:]          # [tile, 2*n_branch]


def _project(x_bf, w_aug_bf, hidden, n_branch, tile, *, lin0_w=None, lin0_b=None):
    n, f_in = x_bf.shape
    grid = (n // tile,)
    fuse_lin0 = lin0_w is not None
    kernel = functools.partial(_project_kernel, hidden=hidden,
                               n_branch=n_branch, fuse_lin0=fuse_lin0)

    in_specs = [pl.BlockSpec((tile, f_in), lambda i: (i, 0))]
    inputs = [x_bf]
    if fuse_lin0:
        in_specs += [pl.BlockSpec(lin0_w.shape, lambda i: (0, 0)),
                     pl.BlockSpec((1, hidden), lambda i: (0, 0))]
        inputs += [lin0_w, lin0_b.reshape(1, -1)]
    in_specs += [pl.BlockSpec(w_aug_bf.shape, lambda i: (0, 0))]
    inputs += [w_aug_bf]

    hs, e = pl.pallas_call(
        kernel,
        out_shape=(jax.ShapeDtypeStruct((n_branch, n, hidden), MXU_DTYPE),
                   jax.ShapeDtypeStruct((n, 2 * n_branch), jnp.float32)),
        grid=grid,
        in_specs=in_specs,
        out_specs=(pl.BlockSpec((n_branch, tile, hidden), lambda i: (0, i, 0)),
                   pl.BlockSpec((tile, 2 * n_branch), lambda i: (i, 0))),
        compiler_params=_compiler_params(1),
    )(*inputs)

    e_src_rows = jnp.transpose(e[:, :n_branch])   # [nb, N], lane-dense rows
    e_dst_cols = e[:, n_branch:]                  # [N, nb]
    return hs, e_src_rows, e_dst_cols


# --------------------------------------------------------------------------
# Fused GAT attention kernel (tiled over dst rows, n_branch adjacencies).
# Per tile it only does the softmax math + one attn @ hs matmul per branch.
# --------------------------------------------------------------------------
def _gat_attn_kernel(*refs, hidden, n_branch, apply_relu):
    esrc_ref, edst_ref, hs_ref, b_ref = refs[:4]
    adj_refs = refs[4:4 + n_branch]
    o_ref = refs[4 + n_branch]

    outs = []
    for br in range(n_branch):
        es = esrc_ref[br:br + 1, :]                      # [1, N]  f32
        ed = edst_ref[:, br:br + 1]                      # [Td, 1] f32
        logits = ed + es                                 # [Td, N]
        logits = jnp.where(logits > 0, logits, 0.2 * logits)   # LeakyReLU(0.2)

        mask = adj_refs[br][...] > 0                     # bool, from bf16 adj
        masked = jnp.where(mask, logits, NEG_INF)
        m = jnp.max(masked, axis=1, keepdims=True)
        ex = jnp.where(mask, jnp.exp(masked - m), 0.0)   # isolated rows -> 0
        denom = jnp.sum(ex, axis=1, keepdims=True) + 1e-16
        attn = ex * pl.reciprocal(denom, approx=True)

        out = jnp.dot(attn.astype(MXU_DTYPE), hs_ref[br],
                      preferred_element_type=jnp.float32) + b_ref[br:br + 1, :]
        if apply_relu:
            out = jnp.maximum(out, 0.0)
        outs.append(out)

    res = outs[0] if n_branch == 1 else jnp.concatenate(outs, axis=1)
    o_ref[...] = res.astype(o_ref.dtype)


def _gat_attention(e_src_rows, e_dst_cols, hs, adjs, bias, *, tile,
                   apply_relu, out_dtype):
    n_branch, n, hidden = hs.shape
    grid = (n // tile,)
    kernel = functools.partial(_gat_attn_kernel, hidden=hidden,
                               n_branch=n_branch, apply_relu=apply_relu)

    in_specs = [
        pl.BlockSpec((n_branch, n), lambda i: (0, 0)),             # e_src rows
        pl.BlockSpec((tile, n_branch), lambda i: (i, 0)),          # e_dst cols
        pl.BlockSpec((n_branch, n, hidden), lambda i: (0, 0, 0)),  # hs (resident)
        pl.BlockSpec((n_branch, hidden), lambda i: (0, 0)),        # biases
    ]
    inputs = [e_src_rows, e_dst_cols, hs, bias]
    for adj in adjs:
        in_specs.append(pl.BlockSpec((tile, n), lambda i: (i, 0)))
        inputs.append(adj)

    return pl.pallas_call(
        kernel,
        out_shape=jax.ShapeDtypeStruct((n, n_branch * hidden), out_dtype),
        grid=grid,
        in_specs=in_specs,
        out_specs=pl.BlockSpec((tile, n_branch * hidden), lambda i: (i, 0)),
        compiler_params=_compiler_params(1),
    )(*inputs)


# --------------------------------------------------------------------------
# Readout part 1: GraphConv scores, tiled over dst rows.
#   score = <rep, w1 - w2> + <(A_selfloop @ rep), w2>   (== w1*x_i + w2*sum_j x_j)
# --------------------------------------------------------------------------
def _score_kernel(rep_ref, rep_full_ref, adj_ref, w_ref, score_ref):
    agg = jnp.dot(adj_ref[...].astype(MXU_DTYPE), rep_full_ref[...],
                  preferred_element_type=jnp.float32)          # [Td, 2H]
    score_ref[...] = jnp.sum(rep_ref[...] * w_ref[0:1, :]
                             + agg * w_ref[1:2, :], axis=1, keepdims=True)


def _graphconv_scores(rep, rep_bf, adj, w_stack, *, tile):
    n, f = rep.shape
    grid = (n // tile,)
    return pl.pallas_call(
        _score_kernel,
        out_shape=jax.ShapeDtypeStruct((n, 1), jnp.float32),
        grid=grid,
        in_specs=[pl.BlockSpec((tile, f), lambda i: (i, 0)),   # rep tile (f32)
                  pl.BlockSpec((n, f), lambda i: (0, 0)),      # rep full (bf16)
                  pl.BlockSpec((tile, n), lambda i: (i, 0)),   # adjacency tile
                  pl.BlockSpec((2, f), lambda i: (0, 0))],     # [w1-w2 ; w2]
        out_specs=pl.BlockSpec((tile, 1), lambda i: (i, 0)),
        compiler_params=_compiler_params(1),
    )(rep, rep_bf, adj, w_stack)


# --------------------------------------------------------------------------
# Readout part 2: per-graph softmax gate (SAGPooling min_score=-1 keeps every
# node) + global_add_pool.  onehot^T is precomputed (no in-kernel transpose).
# --------------------------------------------------------------------------
def _pool_kernel(score_ref, onehot_ref, onehot_t_ref, rep_ref, b_ref, emb_ref):
    score = score_ref[...] + b_ref[0, 0]                   # [N, 1]
    onehot = onehot_ref[...].astype(jnp.float32)           # [N, G2]

    big = jnp.where(onehot > 0, score, NEG_INF)            # [N, G2]
    gmax = jnp.max(big, axis=0, keepdims=True)             # [1, G2]
    node_max = jnp.sum(onehot * gmax, axis=1, keepdims=True)
    ex = jnp.exp(score - node_max)
    gsum = jnp.sum(onehot * ex, axis=0, keepdims=True)
    node_sum = jnp.sum(onehot * gsum, axis=1, keepdims=True)
    soft = ex * pl.reciprocal(node_sum + 1e-16, approx=True)

    x_att = (rep_ref[...] * soft).astype(MXU_DTYPE)
    emb_ref[...] = jnp.dot(onehot_t_ref[...], x_att,
                           preferred_element_type=jnp.float32)


def _pool(scores, onehot, onehot_t, rep, bias_scalar):
    n, f = rep.shape
    g2 = onehot.shape[1]
    vmem = pl.BlockSpec(memory_space=pltpu.MemorySpace.VMEM)
    smem = pl.BlockSpec(memory_space=pltpu.MemorySpace.SMEM)
    return pl.pallas_call(
        _pool_kernel,
        out_shape=jax.ShapeDtypeStruct((g2, f), jnp.float32),
        in_specs=[vmem, vmem, vmem, vmem, smem],
        out_specs=vmem,
        compiler_params=pltpu.CompilerParams(vmem_limit_bytes=VMEM_LIMIT),
    )(scores, onehot, onehot_t, rep, bias_scalar)


# --------------------------------------------------------------------------
# Glue: combined (h+t) adjacency / one-hot construction, weight augmentation.
# --------------------------------------------------------------------------
def build_combined_adjacencies(h_edge_index, t_edge_index, b_edge_index, nh, nt):
    n = nh + nt
    # intra adjacency: block-diagonal, self-loops baked in at build time.
    intra = jnp.zeros((n, n), jnp.float32)
    intra = intra.at[h_edge_index[1], h_edge_index[0]].set(1.0)
    intra = intra.at[nh + t_edge_index[1], nh + t_edge_index[0]].set(1.0)
    intra_sl = jnp.maximum(intra, jnp.eye(n, dtype=jnp.float32))
    # inter adjacency: bipartite edges in both directions (h node, t node).
    inter = jnp.zeros((n, n), jnp.float32)
    inter = inter.at[b_edge_index[0], nh + b_edge_index[1]].set(1.0)   # h <- t
    inter = inter.at[nh + b_edge_index[1], b_edge_index[0]].set(1.0)   # t <- h
    return intra_sl.astype(MASK_DTYPE), inter.astype(MASK_DTYPE)


def build_combined_onehot(h_batch, t_batch, num_graphs):
    groups = jnp.concatenate([h_batch, t_batch + num_graphs])
    return jax.nn.one_hot(groups, 2 * num_graphs, dtype=MASK_DTYPE)


def _augment(ws, a_srcs, a_dsts):
    """W_aug = [W_0 | .. | W_{nb-1} | W_0 a_src0 | .. | W_0 a_dst0 | ..] (bf16)."""
    cols = list(ws)
    cols += [(w @ a).reshape(-1, 1) for w, a in zip(ws, a_srcs)]
    cols += [(w @ a).reshape(-1, 1) for w, a in zip(ws, a_dsts)]
    return jnp.concatenate(cols, axis=1).astype(MXU_DTYPE)


def init_params(key, in_features, hidden):
    keys = jax.random.split(key, 16)
    s = 0.1

    def nrm(k, shape):
        return (s * jax.random.normal(k, shape)).astype(jnp.float32)

    return {
        "lin0_w": nrm(keys[0], (in_features, hidden)),
        "lin0_b": jnp.zeros((hidden,), jnp.float32),
        "conv_w": nrm(keys[1], (hidden, hidden)),
        "conv_asrc": nrm(keys[2], (hidden,)),
        "conv_adst": nrm(keys[3], (hidden,)),
        "conv_b": jnp.zeros((hidden,), jnp.float32),
        "intra_w": nrm(keys[4], (hidden, hidden)),
        "intra_asrc": nrm(keys[5], (hidden,)),
        "intra_adst": nrm(keys[6], (hidden,)),
        "intra_b": jnp.zeros((hidden,), jnp.float32),
        "inter_w": nrm(keys[7], (hidden, hidden)),
        "inter_asrc": nrm(keys[8], (hidden,)),
        "inter_adst": nrm(keys[9], (hidden,)),
        "inter_b": jnp.zeros((hidden,), jnp.float32),
        "sag_w1": nrm(keys[10], (2 * hidden, 1)),
        "sag_w2": nrm(keys[11], (2 * hidden, 1)),
        "sag_b": jnp.zeros((1,), jnp.float32),
    }


def gat_forward(params, h_x, h_edge_index, h_batch,
                t_x, t_edge_index, t_batch, b_edge_index, num_graphs):
    nh, nt = h_x.shape[0], t_x.shape[0]
    n = nh + nt
    hidden = params["conv_w"].shape[1]

    x = jnp.concatenate([h_x, t_x], axis=0)               # fused node set [N, F]
    intra_sl, inter = build_combined_adjacencies(
        h_edge_index, t_edge_index, b_edge_index, nh, nt)
    onehot = build_combined_onehot(h_batch, t_batch, num_graphs)   # [N, G2]
    onehot_t = jnp.transpose(onehot)                               # [G2, N]

    tile1 = _dst_tile(n, 1, VMEM_LIMIT)
    tile2 = _dst_tile(n, 2, VMEM_LIMIT)

    # ---- pass 1: lin0 + relu(GATConv) (self-looped intra adjacency) ----
    waug1 = _augment([params["conv_w"]],
                     [params["conv_asrc"]], [params["conv_adst"]])
    hs1, es1, ed1 = _project(
        x.astype(MXU_DTYPE), waug1, hidden, 1, tile1,
        lin0_w=params["lin0_w"].astype(MXU_DTYPE), lin0_b=params["lin0_b"])
    x1 = _gat_attention(es1, ed1, hs1, [intra_sl],
                        params["conv_b"].reshape(1, -1),
                        tile=tile1, apply_relu=True, out_dtype=MXU_DTYPE)

    # ---- passes 2+3 fused: intra-graph + inter-graph (bipartite) GAT ----
    waug2 = _augment([params["intra_w"], params["inter_w"]],
                     [params["intra_asrc"], params["inter_asrc"]],
                     [params["intra_adst"], params["inter_adst"]])
    hs2, es2, ed2 = _project(x1, waug2, hidden, 2, tile2)
    bias2 = jnp.stack([params["intra_b"], params["inter_b"]], axis=0)
    rep = _gat_attention(es2, ed2, hs2, [intra_sl, inter], bias2,
                         tile=tile2, apply_relu=False,
                         out_dtype=jnp.float32)            # [N, 2*hidden]

    # ---- SAGPooling(min_score=-1) scorer + per-graph softmax + add-pool ----
    rep_bf = rep.astype(MXU_DTYPE)
    w_stack = jnp.stack([(params["sag_w1"] - params["sag_w2"]).reshape(-1),
                         params["sag_w2"].reshape(-1)], axis=0)        # [2, 2H]
    scores = _graphconv_scores(rep, rep_bf, intra_sl, w_stack, tile=tile1)
    emb = _pool(scores, onehot, onehot_t, rep,
                params["sag_b"].reshape(1, 1).astype(jnp.float32))

    h_rep, t_rep = rep[:nh], rep[nh:]
    h_emb, t_emb = emb[:num_graphs], emb[num_graphs:]
    return h_rep, t_rep, h_emb, t_emb


if __name__ == "__main__":
    in_features = 16
    hidden = 32
    nh = nt = 8
    num_graphs = 2

    key = jax.random.PRNGKey(0)
    k_params, k_h, k_t = jax.random.split(key, 3)
    params = init_params(k_params, in_features, hidden)

    h_x = jax.random.normal(k_h, (nh, in_features), dtype=jnp.float32)
    t_x = jax.random.normal(k_t, (nt, in_features), dtype=jnp.float32)

    # two graphs per side: nodes 0..3 -> graph 0, nodes 4..7 -> graph 1
    h_batch = jnp.array([0, 0, 0, 0, 1, 1, 1, 1], dtype=jnp.int32)
    t_batch = jnp.array([0, 0, 0, 0, 1, 1, 1, 1], dtype=jnp.int32)

    # chain-ish edges within each graph (row 0 = src, row 1 = dst)
    h_edge_index = jnp.array(
        [[0, 1, 1, 2, 2, 3, 4, 5, 5, 6, 6, 7],
         [1, 0, 2, 1, 3, 2, 5, 4, 6, 5, 7, 6]], dtype=jnp.int32)
    t_edge_index = jnp.array(
        [[0, 1, 2, 3, 1, 0, 4, 5, 6, 7, 5, 4],
         [1, 2, 3, 0, 0, 3, 5, 6, 7, 4, 4, 7]], dtype=jnp.int32)

    # bipartite edges between h and t nodes (row 0 = h node, row 1 = t node)
    b_edge_index = jnp.array(
        [[0, 1, 2, 3, 4, 5, 6, 7],
         [0, 1, 2, 3, 4, 5, 6, 7]], dtype=jnp.int32)

    outs = gat_forward(params, h_x, h_edge_index, h_batch,
                       t_x, t_edge_index, t_batch, b_edge_index, num_graphs)
    outs = jax.block_until_ready(outs)

    h_rep, t_rep, h_emb, t_emb = outs
    assert h_rep.shape == (nh, 2 * hidden)
    assert t_rep.shape == (nt, 2 * hidden)
    assert h_emb.shape == (num_graphs, 2 * hidden)
    assert t_emb.shape == (num_graphs, 2 * hidden)
    assert all(bool(jnp.all(jnp.isfinite(o.astype(jnp.float32)))) for o in outs)
    print("KERNEL_OK")
</pallas_src>

<mosaic_0001>
module attributes {stable_mosaic.version = 11 : i64} {
  func.func @_project_kernel(%arg0: i32, %arg1: memref<16x16xbf16, #tpu.memory_space<vmem>>, %arg2: memref<16x32xbf16, #tpu.memory_space<vmem>>, %arg3: memref<1x32xf32, #tpu.memory_space<vmem>>, %arg4: memref<32x34xbf16, #tpu.memory_space<vmem>>, %arg5: memref<1x16x32xbf16, #tpu.memory_space<vmem>>, %arg6: memref<16x2xf32, #tpu.memory_space<vmem>>) attributes {dimension_semantics = [#tpu.dimension_semantics<parallel>], iteration_bounds = array<i64: 1>, scalar_prefetch = 0 : i64, scratch_operands = 0 : i64, tpu.core_type = #tpu.core_type<tc>, window_params = [{transform_indices = @transform_0, window_bounds = array<i64: 16, 16>}, {pipeline_mode = #tpu.pipeline_mode<synchronous>, transform_indices = @transform_1, window_bounds = array<i64: 16, 32>}, {pipeline_mode = #tpu.pipeline_mode<synchronous>, transform_indices = @transform_2, window_bounds = array<i64: 1, 32>}, {pipeline_mode = #tpu.pipeline_mode<synchronous>, transform_indices = @transform_3, window_bounds = array<i64: 32, 34>}, {transform_indices = @transform_4, window_bounds = array<i64: 1, 16, 32>}, {transform_indices = @transform_5, window_bounds = array<i64: 16, 2>}]} {
    %c0 = arith.constant 0 : index
    %c0_0 = arith.constant 0 : index
    %0 = vector.load %arg1[%c0, %c0_0] : memref<16x16xbf16, #tpu.memory_space<vmem>>, vector<16x16xbf16>
    %c0_1 = arith.constant 0 : index
    %c0_2 = arith.constant 0 : index
    %1 = vector.load %arg2[%c0_1, %c0_2] : memref<16x32xbf16, #tpu.memory_space<vmem>>, vector<16x32xbf16>
    %cst = arith.constant dense<0.000000e+00> : vector<16x32xf32>
    %2 = tpu.matmul %0, %1, %cst {dimension_numbers = #tpu.dot_dimension_numbers<[1], [0], [0], [1], [0, 0, 1, 1], [], []>} : vector<16x16xbf16>, vector<16x32xbf16>, vector<16x32xf32> -> vector<16x32xf32>
    %c0_3 = arith.constant 0 : index
    %c0_4 = arith.constant 0 : index
    %3 = vector.load %arg3[%c0_3, %c0_4] : memref<1x32xf32, #tpu.memory_space<vmem>>, vector<1x32xf32>
    %4 = vector.broadcast %3 : vector<1x32xf32> to vector<16x32xf32>
    %5 = arith.addf %2, %4 : vector<16x32xf32>
    %6 = arith.truncf %5 : vector<16x32xf32> to vector<16x32xbf16>
    %c0_5 = arith.constant 0 : index
    %c0_6 = arith.constant 0 : index
    %7 = vector.load %arg4[%c0_5, %c0_6] : memref<32x34xbf16, #tpu.memory_space<vmem>>, vector<32x34xbf16>
    %cst_7 = arith.constant dense<0.000000e+00> : vector<16x34xf32>
    %8 = tpu.matmul %6, %7, %cst_7 {dimension_numbers = #tpu.dot_dimension_numbers<[1], [0], [0], [1], [0, 0, 1, 1], [], []>} : vector<16x32xbf16>, vector<32x34xbf16>, vector<16x34xf32> -> vector<16x34xf32>
    %9 = vector.extract_strided_slice %8 {offsets = [0, 0], sizes = [16, 32], strides = [1, 1]} : vector<16x34xf32> to vector<16x32xf32>
    %10 = arith.truncf %9 : vector<16x32xf32> to vector<16x32xbf16>
    %c0_8 = arith.constant 0 : index
    %c0_9 = arith.constant 0 : index
    %c0_10 = arith.constant 0 : index
    %11 = vector.load %arg5[%c0_8, %c0_9, %c0_10] : memref<1x16x32xbf16, #tpu.memory_space<vmem>>, vector<1x16x32xbf16>
    %12 = vector.shape_cast %11 : vector<1x16x32xbf16> to vector<16x32xbf16>
    %13 = vector.shape_cast %10 : vector<16x32xbf16> to vector<1x16x32xbf16>
    tpu.vector_store %arg5[%c0_8, %c0_9, %c0_10], %13 {strides = array<i32>} : memref<1x16x32xbf16, #tpu.memory_space<vmem>>, vector<1x16x32xbf16>,
    %14 = vector.extract_strided_slice %8 {offsets = [0, 32], sizes = [16, 2], strides = [1, 1]} : vector<16x34xf32> to vector<16x2xf32>
    %c0_11 = arith.constant 0 : index
    %c0_12 = arith.constant 0 : index
    %15 = vector.load %arg6[%c0_11, %c0_12] : memref<16x2xf32, #tpu.memory_space<vmem>>, vector<16x2xf32>
    tpu.vector_store %arg6[%c0_11, %c0_12], %14 {strides = array<i32>} : memref<16x2xf32, #tpu.memory_space<vmem>>, vector<16x2xf32>,
    return
  }
  func.func @transform_0(%arg0: i32) -> (i32, i32) {
    %c0_i32 = arith.constant 0 : i32
    %c0_i32_0 = arith.constant 0 : i32
    return %arg0, %c0_i32 : i32, i32
  }
  func.func @transform_1(%arg0: i32) -> (i32, i32) {
    %c0_i32 = arith.constant 0 : i32
    %c0_i32_0 = arith.constant 0 : i32
    %c0_i32_1 = arith.constant 0 : i32
    return %c0_i32, %c0_i32_0 : i32, i32
  }
  func.func @transform_2(%arg0: i32) -> (i32, i32) {
    %c0_i32 = arith.constant 0 : i32
    %c0_i32_0 = arith.constant 0 : i32
    %c0_i32_1 = arith.constant 0 : i32
    return %c0_i32, %c0_i32_0 : i32, i32
  }
  func.func @transform_3(%arg0: i32) -> (i32, i32) {
    %c0_i32 = arith.constant 0 : i32
    %c0_i32_0 = arith.constant 0 : i32
    %c0_i32_1 = arith.constant 0 : i32
    return %c0_i32, %c0_i32_0 : i32, i32
  }
  func.func @transform_4(%arg0: i32) -> (i32, i32, i32) {
    %c0_i32 = arith.constant 0 : i32
    %c0_i32_0 = arith.constant 0 : i32
    %c0_i32_1 = arith.constant 0 : i32
    return %c0_i32, %arg0, %c0_i32_0 : i32, i32, i32
  }
  func.func @transform_5(%arg0: i32) -> (i32, i32) {
    %c0_i32 = arith.constant 0 : i32
    %c0_i32_0 = arith.constant 0 : i32
    return %arg0, %c0_i32 : i32, i32
  }
}

</mosaic_0001>

<bundles_post_ra>
// kernel: tpu_custom_call.1
= control target key start
LH: loop header
LB: loop body
LE: loop exit
PB: predicated region body
PF: predicated region fallthrough
CT: control target
= control target key end

     0   :  { %11 = vsyncpa [#allocation3], 0  ;;  %s436_s0 = inlined_call_operand.hbm [shape: bf16[16,16], index: 0, kind: input, shape index: {}]   ;;  %s437_s1 = inlined_call_operand.hbm [shape: bf16[16,32], index: 1, kind: input, shape index: {}]   ;;  %s438_s2 = inlined_call_operand.vmem [shape: f32[1,32], index: 2, kind: input, shape index: {}]   ;;  %s439_s3 = inlined_call_operand.hbm [shape: bf16[32,34], index: 3, kind: input, shape index: {}]   ;;  %s440_s4 = inlined_call_operand.hbm [shape: bf16[1,16,32], index: 4, kind: output, shape index: {0}]   ;;  %s441_s5 = inlined_call_operand.vmem [shape: f32[16,2], index: 5, kind: output, shape index: {1}]  }
   0x1   :  { %12 = vsyncpa [#allocation6], 0 }
   0x2   :  { %13 = vsyncpa [#allocation4], 0  ;;  %s364_s18 = smov [#allocation5]   ;;  %s365_s20 = smov [#allocation2]  }
   0x3   :  { %s31_s19 = sshll.u32 %s364_s18, 4  ;;  %s19_s21 = sshll.u32 %s365_s20, 4  ;;  %s32_s19 = int_to_ptr.vmem [resolvable:$true] %s31_s19  ;;  %s20_s21 = int_to_ptr.vmem [resolvable:$true] %s19_s21 }
   0x4   :  { %s286_s22 = scalar_lea.vmem %s32_s19, 128  ;;  %p291_p1 = scmp.lt.s32.totalorder %s32_s19, %s32_s19 }
   0x5   :  { %p287_p0 = scmp.ne.s32.totalorder %s32_s19, %s286_s22  ;;  %p292_p2 = scmp.lt.s32.totalorder %s286_s22, %s286_s22 }
   0x7   :  { %p293_p3 = por %p292_p2, %p291_p1 }
   0x9   :  { %p294_p4 = pnand %p293_p3, %p287_p0 }
   0xb   :  { %297 = shalt.err (!%p294_p4)
}
   0xc   :  { %s366_s23 = smov 64   ;;  %s367_s24 = smov 4  }
   0xd   :  { %37 = dma.hbm_to_vmem [thread:$0]  %s437_s1, 128, %s32_s19, [#allocation6], %s366_s23, %s366_s23, %s367_s24  }
   0xe   :  { %s306_s27 = scalar_lea.vmem %s20_s21, 128  ;;  %p311_p6 = scmp.lt.s32.totalorder %s20_s21, %s20_s21 }
   0xf   :  { %p307_p5 = scmp.ne.s32.totalorder %s20_s21, %s306_s27  ;;  %p312_p7 = scmp.lt.s32.totalorder %s306_s27, %s306_s27 }
  0x11   :  { %p313_p8 = por %p312_p7, %p311_p6 }
  0x13   :  { %p314_p9 = pnand %p313_p8, %p307_p5 }
  0x15   :  { %317 = shalt.err (!%p314_p9)
}
  0x16   :  { %25 = dma.hbm_to_vmem [thread:$0]  %s436_s0, 128, %s20_s21, [#allocation3], %s366_s23, %s366_s23, %s367_s24  }
  0x17   :  { %s368_s30 = smov [#allocation7]  }
  0x18   :  { %s45_s6 = sshll.u32 %s368_s30, 4  ;;  %s46_s6 = int_to_ptr.vmem [resolvable:$true] %s45_s6 }
  0x19   :  { %s326_s7 = scalar_lea.vmem %s46_s6, 256  ;;  %p331_p11 = scmp.lt.s32.totalorder %s46_s6, %s46_s6 }
  0x1a   :  { %p327_p10 = scmp.ne.s32.totalorder %s46_s6, %s326_s7  ;;  %p332_p12 = scmp.lt.s32.totalorder %s326_s7, %s326_s7 }
  0x1c   :  { %p333_p13 = por %p332_p12, %p331_p11 }
  0x1e   :  { %p334_p0 = pnand %p333_p13, %p327_p10 }
  0x20   :  { %337 = shalt.err (!%p334_p0)
}
  0x21   :  { %51 = dma.hbm_to_vmem [thread:$0]  %s439_s3, 256, %s46_s6, [#allocation6], %s366_s23, %s366_s23, %s367_s24  }
  0x22   :  { %358 = dma.done.wait [#allocation3], 128  }
  0x23   :  { %359 = vsyncadd [#allocation3], 4294967168 }
  0x24   :  { %360 = dma.done.wait [#allocation6], 384  }
  0x25   :  { %361 = vsyncadd [#allocation6], 4294966912  ;;  %v369_v0 = vmov 0.0   ;;  %vm370_vm0 = vmmov 0   ;;  %v274_v1 = vld [vmem:[#allocation5] sm:$0xff]   ;;  %v275_v2 = vld [vmem:[#allocation2] sm:$0xff]  }
  0x26   :  { %251 = vmatprep.subr.bf16.mxu0 %v369_v0  ;;  %253 = vmatprep.mubr.msk.bf16.mxu0 %vm370_vm0, %v369_v0  ;;  %vm84_vm1 = vcmask 130048   ;;  %v276_v3 = vld [vmem:[#allocation7 + $0x8] sm:$0xff]   ;;  %v277_v4 = vld [vmem:[#allocation7] sm:$0xff]   ;;  %v235_v6 = vld [vmem:[%s438_s2] ss:$0 sm:$0xff]  ;;  %vm146_vm2 = vcmask 261120  }
  0x27   :  { %257 = vmatprep.subr.bf16.mxu1 %v369_v0  ;;  %261 = vmatprep.mubr.msk.bf16.mxu1 %vm370_vm0, %v369_v0  ;;  %vm199_vm3 = vcmask 257024   ;;  %s371_s9 = smov 96   ;;  %s372_s10 = smov [#allocation8]  }
  0x28   :  { %252 = vmatpush3.bf16.msra.mxu0 %v274_v1  ;;  %258 = vmatpush3.bf16.msra.mxu1 %v276_v3  ;;  %s218_s11 = sshll.u32 %s372_s10, 4  ;;  %s219_s11 = int_to_ptr.vmem [resolvable:$true] %s218_s11 }
  0x29   :  { %259 = vmatprep.subr.bf16.mxu1 %v369_v0  ;;  %s338_s2 = scalar_lea.vmem %s219_s11, 128  ;;  %p343_p2 = scmp.lt.s32.totalorder %s219_s11, %s219_s11 }
  0x2a   :  { %p339_p1 = scmp.ne.s32.totalorder %s219_s11, %s338_s2  ;;  %p344_p3 = scmp.lt.s32.totalorder %s338_s2, %s338_s2 }
  0x2b   :  { %254 = vmatmul.mubr.msk.bf16.vlgmr.msra.gmra.mxu0 %vm84_vm1, %v275_v2 }
  0x2c   :  { %260 = vmatpush3.bf16.msra.mxu1 %v277_v4  ;;  %p345_p4 = por %p344_p3, %p343_p2 }
  0x2e   :  { %p346_p5 = pnand %p345_p4, %p339_p1 }
  0xeb   :  { %v122_v5 = vpop.f32.mrf.mxu0 }
  0xec   :  { %v123_v9 = vadd.f32 %v235_v6, %v122_v5 }
  0xed   :  { %v255_v7 = vpop.f32.mrf.mxu0 }
  0xef   :  { %v125_v8 = vpop.f32.mrf.mxu0 }
  0xf0   :  { %v126_v10 = vadd.f32 %v235_v6, %v125_v8 }
  0xf1   :  { %v256_v11 = vpop.f32.mrf.mxu0 }
  0xf2   :  { %v129_v12 = vpack.c.bf16 %v126_v10, %v123_v9 }
  0xf4   :  { %262 = vmatmul.mubr.msk.bf16.vlgmr.msra.gmra.mxu1 %vm146_vm2, %v129_v12 }
 0x1b4   :  { %v184_v13 = vpop.f32.mrf.mxu1 }
 0x1b5   :  { %v244_v14 = vpack.c.bf16 %v184_v13, %v184_v13  ;;  %204 = vrot.lane.b32.xlu0 %v184_v13, %s371_s9 }
 0x1b6   :  { %v263_v15 = vpop.f32.mrf.mxu1 }
 0x1b7   :  { %200 = vst.msk [vmem:[#allocation8] sm:$0xf] %vm199_vm3, %v244_v14 }
 0x1b8   :  { %v187_v16 = vpop.f32.mrf.mxu1 }
 0x1b9   :  { %v245_v17 = vpack.c.bf16 %v187_v16, %v187_v16  ;;  %206 = vrot.lane.b32.xlu0 %v187_v16, %s371_s9 }
 0x1ba   :  { %v264_v18 = vpop.f32.mrf.mxu1 }
 0x1bb   :  { %201 = vst.msk [vmem:[#allocation8 + $0x4] sm:$0xf] %vm199_vm3, %v245_v17 }
 0x1bc   :  { %349 = shalt.err (!%p346_p5)
}
 0x1bd   :  { %224 = dma.vmem_to_hbm [thread:$0]  %s219_s11, 128, %s440_s4, [#allocation4], %s366_s23, %s366_s23, %s367_s24   ;;  %vm210_vm4 = vcmask 15360  }
 0x227   :  { %v205_v19 = vpop.permute.xlu0 %204 }
 0x228   :  { %211 = vst.msk [vmem:[%s441_s5] sm:$0xff] %vm210_vm4, %v205_v19 }
 0x22b   :  { %v207_v20 = vpop.permute.xlu0 %206 }
 0x22c   :  { %212 = vst.msk [vmem:[%s441_s5 + $0x8] sm:$0xff] %vm210_vm4, %v207_v20 }
 0x22d   :  { %362 = dma.done.wait [#allocation4], 128  }
 0x22e   :  { %363 = vsyncadd [#allocation4], 4294967168 }
 0x22f   :  { %232 = vsyncpa [#allocation3], 1 }
 0x230   :  { %233 = vsyncpa [#allocation6], 1 }
 0x231   :  { %234 = vsyncpa [#allocation4], 1 }

</bundles_post_ra>
